<compile_context>
chip_gen: v6e
topology: v6e:2x2x1
jax: 0.10.0
libtpu: 0.0.40
codegen_flags: <defaults>
</compile_context>

<pallas_src>
import jax
import jax.numpy as jnp
from jax.experimental import pallas as pl
from jax.experimental.pallas import tpu as pltpu


def _focus_conv_bn_hswish_kernel(x_ref, w_ref, shift_ref, o_ref):
    # x_ref:     [1, K, TILE_HW]   bf16 space-to-depth'd activations
    # w_ref:     [C2, K]           bf16 1x1-conv weight with BN scale folded in
    # shift_ref: [C2, 1]           f32 folded BN shift = beta - mean * scale
    # o_ref:     [1, C2, TILE_HW]
    y = jnp.dot(w_ref[...], x_ref[0], preferred_element_type=jnp.float32)
    y = y + shift_ref[...]                      # broadcast over lanes
    # Hardswish: x * relu6(x + 3) / 6
    o_ref[0] = (y * jnp.clip(y + 3.0, 0.0, 6.0) * (1.0 / 6.0)).astype(o_ref.dtype)


def focus_forward(x, weight, gamma, beta, running_mean, running_var,
                  eps=1e-5, out_dtype=jnp.bfloat16):
    """Focus.forward for k=1, s=1, g=1, act=True (eval-mode BatchNorm).

    x:      [B, C1, H, W]        (NCHW, like PyTorch)
    weight: [C2, 4*C1, 1, 1]     (PyTorch Conv2d weight layout)
    returns [B, C2, H//2, W//2]  (NCHW), dtype `out_dtype` (default bf16)
    """
    B, C1, H, W = x.shape
    C2 = weight.shape[0]
    H2, W2 = H // 2, W // 2
    K = 4 * C1
    HW = H2 * W2

    # --- space-to-depth (single fused cast+transpose pass over x) ---------
    # [B, C1, H2, hs, W2, ws] -> [B, ws, hs, C1, H2, W2] -> [B, 4*C1, HW]
    # Flattened channel index = (2*ws + hs)*C1 + c, which is exactly the
    # order of torch.cat([::2,::2], [1::2,::2], [::2,1::2], [1::2,1::2]).
    x_cat = jnp.transpose(
        x.astype(jnp.bfloat16).reshape(B, C1, H2, 2, W2, 2),
        (0, 5, 3, 1, 2, 4)).reshape(B, K, HW)

    # --- fold eval-mode BatchNorm into the weight / a per-channel shift ---
    scale = (gamma / jnp.sqrt(running_var + eps)).astype(jnp.float32)       # [C2]
    shift = (beta - running_mean * scale).astype(jnp.float32).reshape(C2, 1)
    w_fold = (weight[:, :, 0, 0].astype(jnp.float32)
              * scale[:, None]).astype(jnp.bfloat16)                        # [C2, K]

    # --- choose the HW (lane) tile -----------------------------------------
    MAX_TILE_HW = 16384
    if HW <= 256:
        TILE_HW = HW                      # tiny: one full-extent block
    else:
        min_hw_tiles = 2 if B == 1 else 1     # keep both v7x TCs busy
        n_tiles = max(pl.cdiv(HW, MAX_TILE_HW), min_hw_tiles)
        TILE_HW = min(128 * pl.cdiv(pl.cdiv(HW, n_tiles), 128), MAX_TILE_HW)
    grid_hw = pl.cdiv(HW, TILE_HW)        # ragged tail handled by Pallas masking

    out_itemsize = jnp.dtype(out_dtype).itemsize
    cost = pl.CostEstimate(
        flops=2 * B * HW * K * C2,
        transcendentals=0,
        bytes_accessed=(B * K * HW * 2 + C2 * K * 2 + C2 * 4
                        + B * C2 * HW * out_itemsize),
    )

    out_flat = pl.pallas_call(
        _focus_conv_bn_hswish_kernel,
        out_shape=jax.ShapeDtypeStruct((B, C2, HW), out_dtype),
        grid=(B, grid_hw),
        in_specs=[
            pl.BlockSpec((1, K, TILE_HW), lambda b, j: (b, 0, j)),
            pl.BlockSpec((C2, K), lambda b, j: (0, 0)),
            pl.BlockSpec((C2, 1), lambda b, j: (0, 0)),
        ],
        out_specs=pl.BlockSpec((1, C2, TILE_HW), lambda b, j: (b, 0, j)),
        compiler_params=pltpu.CompilerParams(
            dimension_semantics=("parallel", "parallel"),
        ),
        cost_estimate=cost,
    )(x_cat, w_fold, shift)

    # [B, C2, HW] -> [B, C2, H2, W2] is a pure view (no transpose, no copy).
    return out_flat.reshape(B, C2, H2, W2)


def _focus_reference(x, weight, gamma, beta, running_mean, running_var, eps=1e-5):
    """Pure-JAX f32 reference matching the PyTorch Focus module (eval mode)."""
    x_cat = jnp.concatenate(
        [x[..., ::2, ::2], x[..., 1::2, ::2], x[..., ::2, 1::2], x[..., 1::2, 1::2]],
        axis=1,
    )  # [B, 4*C1, H2, W2]
    w = weight[:, :, 0, 0]  # [C2, 4*C1]
    y = jnp.einsum("bkhw,ck->bchw", x_cat, w)
    inv_std = gamma / jnp.sqrt(running_var + eps)
    y = y * inv_std[None, :, None, None] + (beta - running_mean * inv_std)[None, :, None, None]
    return y * jnp.clip(y + 3.0, 0.0, 6.0) / 6.0


if __name__ == "__main__":
    key = jax.random.PRNGKey(0)
    k_x, k_w, k_g, k_b, k_m, k_v = jax.random.split(key, 6)

    B, C1, H, W = 2, 4, 16, 16
    C2 = 8

    x = jax.random.normal(k_x, (B, C1, H, W), dtype=jnp.float32)
    # Conv2d(4*C1, C2, k=1, bias=False) weight, deterministic init
    weight = 0.1 * jax.random.normal(k_w, (C2, 4 * C1, 1, 1), dtype=jnp.float32)
    # BatchNorm2d(C2) parameters / running stats (eval mode), deterministic
    gamma = 1.0 + 0.05 * jax.random.normal(k_g, (C2,), dtype=jnp.float32)
    beta = 0.05 * jax.random.normal(k_b, (C2,), dtype=jnp.float32)
    running_mean = 0.1 * jax.random.normal(k_m, (C2,), dtype=jnp.float32)
    running_var = 1.0 + 0.1 * jax.random.uniform(k_v, (C2,), dtype=jnp.float32)

    out = focus_forward(x, weight, gamma, beta, running_mean, running_var)
    out = jax.block_until_ready(out)
    assert out.shape == (B, C2, H // 2, W // 2), out.shape

    ref = _focus_reference(x, weight, gamma, beta, running_mean, running_var)
    # bf16 matmul operands + bf16 output store -> generous tolerance
    err = float(jnp.max(jnp.abs(out.astype(jnp.float32) - ref)))
    assert err < 5e-2, err

    print("KERNEL_OK")
</pallas_src>

<mosaic_0001>
module attributes {stable_mosaic.version = 11 : i64} {
  func.func @_focus_conv_bn_hswish_kernel(%arg0: i32, %arg1: i32, %arg2: memref<1x16x64xbf16, #tpu.memory_space<vmem>>, %arg3: memref<8x16xbf16, #tpu.memory_space<vmem>>, %arg4: memref<8x1xf32, #tpu.memory_space<vmem>>, %arg5: memref<1x8x64xbf16, #tpu.memory_space<vmem>>) attributes {dimension_semantics = [#tpu.dimension_semantics<parallel>, #tpu.dimension_semantics<parallel>], iteration_bounds = array<i64: 2, 1>, scalar_prefetch = 0 : i64, scratch_operands = 0 : i64, tpu.core_type = #tpu.core_type<tc>, window_params = [{transform_indices = @transform_0, window_bounds = array<i64: 1, 16, 64>}, {pipeline_mode = #tpu.pipeline_mode<synchronous>, transform_indices = @transform_1, window_bounds = array<i64: 8, 16>}, {pipeline_mode = #tpu.pipeline_mode<synchronous>, transform_indices = @transform_2, window_bounds = array<i64: 8, 1>}, {transform_indices = @transform_3, window_bounds = array<i64: 1, 8, 64>}]} {
    %c0 = arith.constant 0 : index
    %c0_0 = arith.constant 0 : index
    %0 = vector.load %arg3[%c0, %c0_0] : memref<8x16xbf16, #tpu.memory_space<vmem>>, vector<8x16xbf16>
    %c0_1 = arith.constant 0 : index
    %c0_2 = arith.constant 0 : index
    %c0_3 = arith.constant 0 : index
    %1 = vector.load %arg2[%c0_1, %c0_2, %c0_3] : memref<1x16x64xbf16, #tpu.memory_space<vmem>>, vector<1x16x64xbf16>
    %2 = vector.shape_cast %1 : vector<1x16x64xbf16> to vector<16x64xbf16>
    %cst = arith.constant dense<0.000000e+00> : vector<8x64xf32>
    %3 = tpu.matmul %0, %2, %cst {dimension_numbers = #tpu.dot_dimension_numbers<[1], [0], [0], [1], [0, 0, 1, 1], [], []>} : vector<8x16xbf16>, vector<16x64xbf16>, vector<8x64xf32> -> vector<8x64xf32>
    %c0_4 = arith.constant 0 : index
    %c0_5 = arith.constant 0 : index
    %4 = vector.load %arg4[%c0_4, %c0_5] : memref<8x1xf32, #tpu.memory_space<vmem>>, vector<8x1xf32>
    %5 = vector.broadcast %4 : vector<8x1xf32> to vector<8x64xf32>
    %6 = arith.addf %3, %5 : vector<8x64xf32>
    %cst_6 = arith.constant 3.000000e+00 : f32
    %7 = vector.broadcast %cst_6 : f32 to vector<8x64xf32>
    %8 = arith.addf %6, %7 : vector<8x64xf32>
    %cst_7 = arith.constant 0.000000e+00 : f32
    %cst_8 = arith.constant 6.000000e+00 : f32
    %9 = vector.broadcast %cst_7 : f32 to vector<8x64xf32>
    %10 = arith.maximumf %9, %8 : vector<8x64xf32>
    %11 = vector.broadcast %cst_8 : f32 to vector<8x64xf32>
    %12 = arith.minimumf %11, %10 : vector<8x64xf32>
    %13 = arith.mulf %6, %12 : vector<8x64xf32>
    %cst_9 = arith.constant 0.166666672 : f32
    %14 = vector.broadcast %cst_9 : f32 to vector<8x64xf32>
    %15 = arith.mulf %13, %14 : vector<8x64xf32>
    %16 = arith.truncf %15 : vector<8x64xf32> to vector<8x64xbf16>
    %c0_10 = arith.constant 0 : index
    %c0_11 = arith.constant 0 : index
    %c0_12 = arith.constant 0 : index
    %17 = vector.load %arg5[%c0_10, %c0_11, %c0_12] : memref<1x8x64xbf16, #tpu.memory_space<vmem>>, vector<1x8x64xbf16>
    %18 = vector.shape_cast %17 : vector<1x8x64xbf16> to vector<8x64xbf16>
    %19 = vector.shape_cast %16 : vector<8x64xbf16> to vector<1x8x64xbf16>
    tpu.vector_store %arg5[%c0_10, %c0_11, %c0_12], %19 {strides = array<i32>} : memref<1x8x64xbf16, #tpu.memory_space<vmem>>, vector<1x8x64xbf16>,
    return
  }
  func.func @transform_0(%arg0: i32, %arg1: i32) -> (i32, i32, i32) {
    %c0_i32 = arith.constant 0 : i32
    %c0_i32_0 = arith.constant 0 : i32
    return %arg0, %c0_i32, %arg1 : i32, i32, i32
  }
  func.func @transform_1(%arg0: i32, %arg1: i32) -> (i32, i32) {
    %c0_i32 = arith.constant 0 : i32
    %c0_i32_0 = arith.constant 0 : i32
    %c0_i32_1 = arith.constant 0 : i32
    return %c0_i32, %c0_i32_0 : i32, i32
  }
  func.func @transform_2(%arg0: i32, %arg1: i32) -> (i32, i32) {
    %c0_i32 = arith.constant 0 : i32
    %c0_i32_0 = arith.constant 0 : i32
    %c0_i32_1 = arith.constant 0 : i32
    return %c0_i32, %c0_i32_0 : i32, i32
  }
  func.func @transform_3(%arg0: i32, %arg1: i32) -> (i32, i32, i32) {
    %c0_i32 = arith.constant 0 : i32
    %c0_i32_0 = arith.constant 0 : i32
    return %arg0, %c0_i32, %arg1 : i32, i32, i32
  }
}

</mosaic_0001>

<bundles_post_ra>
// kernel: tpu_custom_call.1
= control target key start
LH: loop header
LB: loop body
LE: loop exit
PB: predicated region body
PF: predicated region fallthrough
CT: control target
= control target key end

     0   :  { %8 = vsyncpa [#allocation3], 0  ;;  %s740_s0 = inlined_call_operand.hbm [shape: bf16[2,16,64], index: 0, kind: input, shape index: {}]   ;;  %s741_s1 = inlined_call_operand.vmem [shape: bf16[8,16], index: 1, kind: input, shape index: {}]   ;;  %s742_s2 = inlined_call_operand.vmem [shape: f32[8,1], index: 2, kind: input, shape index: {}]   ;;  %s743_s3 = inlined_call_operand.hbm [shape: bf16[2,8,64], index: 3, kind: output, shape index: {}]  }
   0x1   :  { %10 = vsyncpa [#allocation3 + $0x1], 0 }
   0x2   :  { %11 = vsyncpa [#allocation4], 0 }
   0x3   :  { %13 = vsyncpa [#allocation4 + $0x1], 0  ;;  %s601_s12 = smov 0   ;;  %s603_s13 = smov 0  }
   0x4   :  { %s605_s14 = smov 0   ;;  %s607_s15 = smov 0  }
   0x5   :  { %s609_s16 = smov 0   ;;  %s611_s17 = smov 0  }
   0x6 LB: > { %s370_s18 = sadd.s32 4294967295, %s572_s17   ;;  %s371_s19 = sadd.s32 4294967294, %s572_s17   ;;  %s572_s17 = sphi %s611_s17, %s19_s17   ;;  %s568_s16 = sphi %s609_s16, %s754_s16   ;;  %s564_s15 = sphi %s607_s15, %s753_s15   ;;  %s560_s14 = sphi %s605_s14, %s752_s14   ;;  %s556_s13 = sphi %s603_s13, %s751_s13   ;;  %s552_s12 = sphi %s601_s12, %s750_s12  }
   0x7   : > { %s31_s20 = sadd.s32 1, %s568_s16  ;;  %s40_s21 = sadd.s32 1, %s560_s14 }
   0x8   : > { %p33_p0 = scmp.ge.s32.totalorder %s31_s20, 2  ;;  %p47_p1 = scmp.ne.s32.totalorder %s560_s14, %s556_s13 }
   0x9   : > { %p48_p2 = scmp.eq.s32.totalorder %s572_s17, 0  ;;  %p53_p3 = scmp.ne.s32.totalorder %s556_s13, %s552_s12 }
   0xa   : > { %s756_s20 = smov (%p33_p0, %s31_s20), 0  ;;  %p54_p5 = scmp.eq.s32.totalorder %s370_s18, 0 }
   0xb   : > { %p642_p4 = por %p48_p2, %p47_p1  ;;  %s35_s23 = ssub.s32 %s568_s16, %s756_s20 }
   0xc   : > { %p121_p6 = scmp.eq.s32.totalorder %s370_s18, 1  ;;  %p38_p7 = scmp.eq.s32.totalorder %s35_s23, 0 }
   0xd   : > { %p648_p8 = por %p54_p5, %p53_p3  ;;  %p127_p10 = scmp.eq.s32.totalorder %s371_s19, 1 }
   0xe   : > { %p652_p9 = por %p121_p6, %p47_p1  ;;  %p407_p13 = scmp.lt.s32.totalorder %s572_s17, 2 }
   0xf   : > { %s657_s26 = scalar_select %p38_p7, %s560_s14, %s40_s21  }
  0x10   : > { %p659_p11 = por %p127_p10, %p53_p3  ;;  %s153_s28 = sand.u32 1, %s560_s14  }
  0x11   : > { %s374_s29 = sshll.u32 %s153_s28, 3  ;;  %s386_s30 = sshll.u32 %s568_s16, 7 }
  0x12   : > { %s164_s6 = scalar_lea.hbm %s740_s0, %s386_s30  ;;  %s157_s7 = scalar_lea.vmem [#allocation2], %s374_s29 }
  0x13   : > { %s165_s8 = sshll.u32 %s157_s7, 4  ;;  %p672_p0 = pnand %p407_p13, %p642_p4  ;;  %s166_s8 = int_to_ptr.vmem [resolvable:$true] %s165_s8 }
  0x14   : > { %p377_p1 = scmp.ge.s32.totalorder %s572_s17, 1  ;;  %s154_s10 = scalar_lea.sflag [#allocation3], %s153_s28 }
  0x15   : > { %p466_p2 = pneg %p672_p0  ;;  %s477_s11 = scalar_lea.vmem %s166_s8, 128 }
  0x16   : > { %p478_p3 = scmp.ne.s32.totalorder %s166_s8, %s477_s11  ;;  %s574_s18 = smov [#allocation2]  }
  0x17   : > { %s482_s19 = sshll.u32 %s574_s18, 4  ;;  %s483_s19 = int_to_ptr.vmem [resolvable:$false] %s482_s19 }
  0x18   : > { %p480_p5 = pnand %p478_p3, %p466_p2  ;;  %s484_s21 = scalar_lea.vmem %s483_s19, 256 }
  0x19   : > { %p485_p7 = scmp.lt.s32.totalorder %s166_s8, %s483_s19  ;;  %p486_p10 = scmp.lt.s32.totalorder %s484_s21, %s477_s11 }
  0x1a   : > { %p481_p6 = pneg %p480_p5 }
  0x1b   : > { %p487_p12 = por %p486_p10, %p485_p7 }
  0x1d   : > { %p488_p4 = pnand %p487_p12, %p481_p6 }
  0x1f   : > { %491 = shalt.err (!%p488_p4)
}
  0x20   : > { %s575_s22 = smov 64   ;;  %s576_s23 = smov 4  }
  0x21   : > { %402 = dma.hbm_to_vmem [thread:$0]  (!%p672_p0), %s164_s6, 128, %s166_s8, %s154_s10, %s575_s22, %s575_s22, %s576_s23  }
  0x22   : > { %p173_p13 = scmp.lt.s32.totalorder %s572_s17, 3 }
  0x24   : > { %p174_p2 = pnand %p377_p1, %p173_p13 }
  0x25   : > { %s685_s28 = sand.u32 (!%p174_p2), 1, %s556_s13  }
  0x26   : > { %177 = sbr.rel (%p174_p2) target bundleno = 269 (0x10d), region = 32  ;;  %s378_s29 = sshll.u32 (!%p174_p2), %s685_s28, 3 }
  0x27   : > { %s180_s30 = scalar_lea.sflag (!%p174_p2), [#allocation3], %s685_s28  ;;  %s183_s4 = scalar_lea.vmem (!%p174_p2), [#allocation2], %s378_s29 }
  0x2b   : > { %543 = dma.done.wait (%p648_p8), %s180_s30, 128  }
  0x2c   : > { %545 = vsyncadd (%p648_p8), %s180_s30, 4294967168  ;;  %v577_v0 = vmov 0.0   ;;  %vm578_vm0 = vmmov 0   ;;  %v579_v1 = vmov 0   ;;  %v463_v2 = vld [vmem:[%s183_s4] sm:$0xff]   ;;  %vm222_vm1 = vcmask 130048  }
  0x2d   : > { %389 = vmatprep.subr.bf16.mxu0 %v577_v0  ;;  %391 = vmatprep.mubr.msk.bf16.mxu0 %vm578_vm0, %v577_v0  ;;  %v210_v3 = vld [vmem:[%s742_s2] sm:$0xff]  ;;  %s379_s24 = sshll.u32 %s685_s28, 2  ;;  %s383_s9 = sshll.u32 %s564_s15, 6  ;;  %vm272_vm2 = vcmask 519168  }
  0x2e   : > { %462 = vset.pattern.permute.xlu0 %v579_v1  ;;  %390 = vmatpush3.bf16.msra.mxu0 %v463_v2  ;;  %v207_v4 = vld [vmem:[%s741_s1] sm:$0xf]  ;;  %s205_s10 = scalar_lea.vmem [#allocation5], %s379_s24  ;;  %s287_s21 = scalar_lea.hbm %s743_s3, %s383_s9 }
  0x2f   : > { %213 = vperm.xlu0 %462, %v210_v3   ;;  %s289_s11 = sshll.u32 %s205_s10, 4  ;;  %s275_s22 = scalar_lea.sflag [#allocation4], %s685_s28  ;;  %s290_s11 = int_to_ptr.vmem [resolvable:$true] %s289_s11 }
  0x30   : > { %s492_s23 = scalar_lea.vmem %s290_s11, 64  ;;  %s580_s29 = smov [#allocation5]  }
  0x31   : > { %392 = vmatmul.mubr.msk.bf16.vlgmr.msra.gmra.mxu0 %vm222_vm1, %v207_v4  ;;  %p493_p8 = scmp.ne.s32.totalorder %s290_s11, %s492_s23  ;;  %s496_s30 = sshll.u32 %s580_s29, 4  ;;  %s497_s30 = int_to_ptr.vmem [resolvable:$false] %s496_s30 }
  0x32   : > { %s498_s15 = scalar_lea.vmem %s497_s30, 128  ;;  %p499_p1 = scmp.lt.s32.totalorder %s290_s11, %s497_s30 }
  0x33   : > { %p494_p12 = pnand %p493_p8, %p652_p9  ;;  %p500_p3 = scmp.lt.s32.totalorder %s498_s15, %s492_s23 }
  0x35   : > { %p495_p0 = pneg %p494_p12  ;;  %p501_p5 = por %p500_p3, %p499_p1 }
  0x37   : > { %p502_p6 = pnand %p501_p5, %p495_p0 }
  0xaa   : > { %v214_v5 = vpop.permute.xlu0 %213 }
  0xf1   : > { %v260_v6 = vpop.f32.mrf.mxu0 }
  0xf2   : > { %v261_v7 = vadd.f32 %v260_v6, %v214_v5 }
  0xf3   : > { %v393_v8 = vpop.f32.mrf.mxu0 }
  0xf4   : > { %v266_v9 = vadd.f32 3.0, %v261_v7 }
  0xf5   : > { %v263_v10 = vpop.f32.mrf.mxu0 }
  0xf6   : > { %v267_v11 = vmax.f32 %v266_v9, 0.0 }
  0xf7   : > { %v394_v12 = vpop.f32.mrf.mxu0 }
  0xf8   : > { %v268_v13 = vmin.f32 %v267_v11, 6.0 }
  0xfa   : > { %v269_v14 = vmul.f32 %v268_v13, %v261_v7 }
  0xfc   : > { %v270_v15 = vmul.f32 0.16666667, %v269_v14 }
  0xfe   : > { %v271_v16 = vpack.c.bf16 %v270_v15, %v270_v15 }
 0x100   : > { %273 = vst.msk [vmem:[%s205_s10] sm:$0xf] %vm272_vm2, %v271_v16 }
 0x101   : > { %505 = shalt.err (!%p502_p6)
}
 0x102   : > { %s506_s4 = scalar_lea.hbm %s287_s21, 64  ;;  %s510_s6 = scalar_lea.hbm %s743_s3, 128 }
 0x103   : > { %p507_p7 = scmp.ne.s32.totalorder %s287_s21, %s506_s4  ;;  %p511_p13 = scmp.lt.s32.totalorder %s287_s21, %s743_s3 }
 0x104   : > { %p512_p2 = scmp.lt.s32.totalorder %s510_s6, %s506_s4 }
 0x105   : > { %p508_p10 = pnand %p507_p7, %p652_p9 }
 0x106   : > { %p513_p8 = por %p512_p2, %p511_p13 }
 0x107   : > { %p509_p4 = pneg %p508_p10 }
 0x109   : > { %p514_p12 = pnand %p513_p8, %p509_p4 }
 0x10b   : > { %517 = shalt.err (!%p514_p12)
}
 0x10c   : > { %397 = dma.vmem_to_hbm [thread:$0]  (%p652_p9), %s290_s11, 64, %s287_s21, %s275_s22  }
 0x10d PF: > { %s301_s24 = sand.u32 1, %s552_s12   ;;  %p749_p0 = scmp.ge.s32.totalorder %s572_s17, 2 }
 0x10e   : > { %s302_s9 = scalar_lea.sflag [#allocation4], %s301_s24 }
 0x10f   : > { %p404_p1 = pnand %p749_p0, %p659_p11 }
 0x111   : > { %p405_p3 = pneg %p404_p1 }
 0x113   : > { %547 = dma.done.wait (%p405_p3), %s302_s9, 64  }
 0x114   : > { %549 = vsyncadd (%p405_p3), %s302_s9, 4294967232  ;;  %s19_s17 = sadd.s32 1, %s572_s17   ;;  %s750_s12 = smov %s556_s13 }
 0x115   : > { %p16_p5 = scmp.ge.s32.totalorder %s19_s17, 4   ;;  %s751_s13 = smov %s560_s14 }
 0x116   : > { %s752_s14 = smov %s657_s26  ;;  %s753_s15 = smov %s568_s16 }
 0x117   : > { %s754_s16 = smov %s756_s20  ;;  %18 = sbr.rel (!%p16_p5) target bundleno = 6 (0x6), region = 77 }
 0x11c   :  { %307 = vsyncpa [#allocation3], 1 }
 0x11d   :  { %309 = vsyncpa [#allocation3 + $0x1], 1 }
 0x11e   :  { %310 = vsyncpa [#allocation4], 1 }
 0x11f   :  { %312 = vsyncpa [#allocation4 + $0x1], 1 }

</bundles_post_ra>
